<compile_context>
chip_gen: v6e
topology: v6e:2x2x1
jax: 0.10.0
libtpu: 0.0.40
codegen_flags: <defaults>
</compile_context>

<pallas_src>
import functools

import numpy as np

import jax
import jax.numpy as jnp
from jax.experimental import pallas as pl
from jax.experimental.pallas import tpu as pltpu


# ---------------------------------------------------------------------------
# Sizing helpers
# ---------------------------------------------------------------------------
def _vmem_capacity_bytes():
    try:
        return int(pltpu.get_tpu_info().vmem_capacity_bytes)
    except Exception:
        return 64 * 1024 * 1024  # conservative fallback (v7x per-core VMEM)


def _pick_hw_tile(hw, nc, itemsize, max_tile_bytes):
    """Lane tile (multiple of 128) for streaming the (NC, HW) image slabs.

    Prefers the largest 128-multiple divisor of the 128-rounded HW that fits
    the per-buffer byte budget; if the best divisor would waste most of the
    budget, uses the full budget and lets the wrapper zero-pad the tail tile.
    """
    hw128 = ((hw + 127) // 128) * 128
    max_lanes = max(128, (max_tile_bytes // max(1, nc * itemsize)) // 128 * 128)
    if hw128 <= max_lanes:
        return hw128
    best = 128
    for t in range(128, max_lanes + 1, 128):
        if hw128 % t == 0:
            best = t
    if best * 2 <= max_lanes:
        best = max_lanes  # no good divisor: take the big tile, pad the tail
    return best


# ---------------------------------------------------------------------------
# Kernel 1: streamed spatial-sum reduction (HBM-bound)
# ---------------------------------------------------------------------------
def _stream_pool_kernel(pos_ref, neg_ref, psum_ref, nsum_ref):
    t = pl.program_id(1)

    @pl.when(t == 0)
    def _init():
        psum_ref[...] = jnp.zeros_like(psum_ref)
        nsum_ref[...] = jnp.zeros_like(nsum_ref)

    # Narrow (bf16/uint8/...) tiles are cast to f32 in VMEM, not in HBM.
    psum_ref[...] += jnp.sum(pos_ref[...].astype(jnp.float32),
                             axis=-1, keepdims=True)[None]
    nsum_ref[...] += jnp.sum(neg_ref[...].astype(jnp.float32),
                             axis=-1, keepdims=True)[None]


# ---------------------------------------------------------------------------
# Kernel 2: backbone / encoder / scores / soft-margin loss (micro, runs once)
# ---------------------------------------------------------------------------
def _head_kernel(pool_p_ref, pool_n_ref, gm_p_ref, gm_n_ref, inv_np_p_ref,
                 inv_np_n_ref, wbb_ref, bbb_ref, wenc_ref, benc_ref, core_ref,
                 rank_ref, brank_ref, diff_ref, bdiff_ref, *,
                 tanh_scale, score_scale, latent_dim):
    D = latent_dim
    factor_const = score_scale * 2.0 / D
    core = core_ref[...]          # (1, D) CoreMat diagonal weight
    wbb, bbb = wbb_ref[...], bbb_ref[...]
    wenc, benc = wenc_ref[...], benc_ref[...]

    def branch(pool, gm, inv_npairs):
        # Backbone stand-in: GAP (done upstream) -> Linear(C->F) -> ReLU.
        feat = jnp.maximum(
            jnp.dot(pool, wbb, preferred_element_type=jnp.float32) + bbb, 0.0)
        # ImgEncoder stand-in: Linear(F->D) + scaled tanh -> codes in (-1, 1).
        lat = jnp.tanh(tanh_scale *
                       (jnp.dot(feat, wenc,
                                preferred_element_type=jnp.float32) + benc))
        blat = jnp.sign(lat)      # torch sign(): sign(0)==0, same as jnp.sign

        # sum_{i<j in group} L_i*L_j == ((sum L)^2 - sum L^2)/2 per dim.
        # Four small (G,N)@(N,D) MXU dots; this kernel runs once off the
        # streaming critical path, so robustness beats fusion here.
        s1 = jnp.dot(gm, lat, preferred_element_type=jnp.float32)
        s2 = jnp.dot(gm, lat * lat, preferred_element_type=jnp.float32)
        b1 = jnp.dot(gm, blat, preferred_element_type=jnp.float32)
        b2 = jnp.dot(gm, blat * blat, preferred_element_type=jnp.float32)

        factor = inv_npairs * factor_const   # (G, 1)
        # CoreMat + mean as a VPU multiply + cross-lane reduce (no width-1 MXU).
        score = jnp.sum(0.5 * (s1 * s1 - s2) * core,
                        axis=-1, keepdims=True) * factor
        bscore = jnp.sum(0.5 * (b1 * b1 - b2) * core,
                         axis=-1, keepdims=True) * factor
        return score, bscore

    pscore, bpscore = branch(pool_p_ref[...], gm_p_ref[...], inv_np_p_ref[...])
    nscore, bnscore = branch(pool_n_ref[...], gm_n_ref[...], inv_np_n_ref[...])

    diff = pscore - nscore
    bdiff = bpscore - bnscore

    def softplus_neg(x):   # stable soft_margin_loss(x, target=1) = softplus(-x)
        return jnp.maximum(-x, 0.0) + jnp.log(1.0 + jnp.exp(-jnp.abs(x)))

    rank_ref[...] = softplus_neg(diff)
    brank_ref[...] = softplus_neg(bdiff)
    diff_ref[...] = diff
    bdiff_ref[...] = bdiff


# ---------------------------------------------------------------------------
# Wrapper
# ---------------------------------------------------------------------------
def fashionnet_forward(posi_mask, posi_imgs, nega_mask, nega_imgs, params,
                       n_groups, tanh_scale=1.0, score_scale=10.0,
                       hw_tile=None, max_tile_bytes=None,
                       vmem_limit_bytes=None, image_buffers=2):
    """FashionNet.forward (use_visual=True, WEIGHTED_HASH_I) in Pallas."""
    N, C, H, W = posi_imgs.shape
    HW, NC = H * W, N * C
    G = int(n_groups)
    f32 = jnp.float32

    # ----- per-generation streaming budget -----
    vmem_cap = _vmem_capacity_bytes()
    if max_tile_bytes is None:
        # 2 streams x 2 buffers x tile must sit comfortably inside VMEM:
        # 16 MiB tiles on 128-MiB chips (v5e/v6e), 8 MiB tiles on v7x.
        max_tile_bytes = min(16 * 1024 * 1024, vmem_cap // 8)
    if vmem_limit_bytes is None:
        vmem_limit_bytes = min(int(vmem_cap * 0.85), 110 * 1024 * 1024)

    # Images keep their native dtype; (N*C, H*W) is a free row-major reshape
    # and gives a sublane-dense, (8,128)-friendly streaming layout.
    pos = posi_imgs.reshape(NC, HW)
    neg = nega_imgs.reshape(NC, HW)
    itemsize = jnp.dtype(pos.dtype).itemsize

    if hw_tile is None:
        hw_tile = _pick_hw_tile(HW, NC, itemsize, max_tile_bytes)
    assert hw_tile % 128 == 0 or hw_tile >= HW, "hw_tile must be a 128-multiple"

    n_tiles = -(-HW // hw_tile)
    n_split = 2 if n_tiles >= 2 else 1          # HW-axis split across TCs (v7x)
    tiles_per_split = -(-n_tiles // n_split)
    hw_pad = n_split * tiles_per_split * hw_tile
    if hw_pad != HW:
        # Zero-padding the spatial axis does not change the spatial sums.
        pos = jnp.pad(pos, ((0, 0), (0, hw_pad - HW)))
        neg = jnp.pad(neg, ((0, 0), (0, hw_pad - HW)))

    img_kwargs = {}
    if image_buffers is not None and int(image_buffers) != 2:
        img_kwargs["pipeline_mode"] = pl.Buffered(int(image_buffers))
    img_spec = pl.BlockSpec((NC, hw_tile),
                            lambda c, t: (0, c * tiles_per_split + t),
                            **img_kwargs)
    sum_spec = pl.BlockSpec((1, NC, 1), lambda c, t: (c, 0, 0))

    cost = pl.CostEstimate(
        flops=int(2 * (pos.size + neg.size)),
        transcendentals=0,
        bytes_accessed=int(pos.nbytes) + int(neg.nbytes) + 2 * n_split * NC * 4)

    psums, nsums = pl.pallas_call(
        _stream_pool_kernel,
        out_shape=(jax.ShapeDtypeStruct((n_split, NC, 1), f32),
                   jax.ShapeDtypeStruct((n_split, NC, 1), f32)),
        grid=(n_split, tiles_per_split),
        in_specs=[img_spec, img_spec],
        out_specs=(sum_spec, sum_spec),
        compiler_params=pltpu.CompilerParams(
            dimension_semantics=("parallel", "arbitrary"),
            vmem_limit_bytes=int(vmem_limit_bytes)),
        cost_estimate=cost,
    )(pos, neg)

    # ----- negligible glue in plain JAX: combine splits + global-average-pool
    inv_hw = 1.0 / float(HW)
    pool_p = (psums.sum(axis=0).reshape(N, C) * inv_hw).astype(f32)
    pool_n = (nsums.sum(axis=0).reshape(N, C) * inv_hw).astype(f32)

    # Group-membership matrices (replaces the torch.unique / boolean gathers).
    gids = jnp.arange(G)
    gm_p = (jnp.asarray(posi_mask)[None, :] == gids[:, None]).astype(f32)
    gm_n = (jnp.asarray(nega_mask)[None, :] == gids[:, None]).astype(f32)
    cnt_p = gm_p.sum(axis=1, keepdims=True)
    cnt_n = gm_n.sum(axis=1, keepdims=True)
    inv_np_p = 1.0 / jnp.maximum(cnt_p * (cnt_p - 1.0) * 0.5, 1.0)
    inv_np_n = 1.0 / jnp.maximum(cnt_n * (cnt_n - 1.0) * 0.5, 1.0)

    wbb = params["w_backbone"].astype(f32)                 # (C, F)
    F_dim = wbb.shape[1]
    wenc = params["w_enc"].astype(f32)                     # (F, D)
    D = wenc.shape[1]
    bbb = params["b_backbone"].astype(f32).reshape(1, F_dim)
    benc = params["b_enc"].astype(f32).reshape(1, D)
    core_row = params["core_w"].astype(f32).reshape(1, D)

    def full(shape):
        zeros = (0,) * len(shape)
        return pl.BlockSpec(shape, lambda i, _z=zeros: _z)

    head = functools.partial(_head_kernel,
                             tanh_scale=float(tanh_scale),
                             score_scale=float(score_scale),
                             latent_dim=D)

    rank_loss, binary_loss, diff, bdiff = pl.pallas_call(
        head,
        out_shape=tuple(jax.ShapeDtypeStruct((G, 1), f32) for _ in range(4)),
        grid=(1,),
        in_specs=[full((N, C)), full((N, C)),
                  full((G, N)), full((G, N)),
                  full((G, 1)), full((G, 1)),
                  full((C, F_dim)), full((1, F_dim)),
                  full((F_dim, D)), full((1, D)), full((1, D))],
        out_specs=tuple(full((G, 1)) for _ in range(4)),
    )(pool_p, pool_n, gm_p, gm_n, inv_np_p, inv_np_n,
      wbb, bbb, wenc, benc, core_row)

    loss = dict(rank_loss=rank_loss, binary_loss=binary_loss)
    accuracy = dict(accuracy=diff > 0, binary_accuracy=bdiff > 0)
    return loss, accuracy


# ---------------------------------------------------------------------------
# Pure-JAX reference (pairwise triu formulation, as in the PyTorch module)
# ---------------------------------------------------------------------------
def _reference_forward(posi_mask, posi_imgs, nega_mask, nega_imgs, params,
                       n_groups, tanh_scale=1.0, score_scale=10.0):
    HIGH = jax.lax.Precision.HIGHEST

    def latents(imgs):
        x = jnp.asarray(imgs, jnp.float32)
        pooled = jnp.mean(x, axis=(2, 3))
        feat = jnp.maximum(
            jnp.matmul(pooled, params["w_backbone"], precision=HIGH)
            + params["b_backbone"], 0.0)
        return jnp.tanh(tanh_scale *
                        (jnp.matmul(feat, params["w_enc"], precision=HIGH)
                         + params["b_enc"]))

    core = params["core_w"][:, 0]

    def scores(lat, mask):
        mask = np.asarray(mask)
        out = []
        for g in range(n_groups):
            sub = lat[np.nonzero(mask == g)[0]]
            ii, jj = np.triu_indices(sub.shape[0], k=1)
            x = sub[ii] * sub[jj]
            out.append(jnp.mean(x * core) * (score_scale * 2.0))
        return jnp.stack(out).reshape(-1, 1)

    lp, ln = latents(posi_imgs), latents(nega_imgs)
    diff = scores(lp, posi_mask) - scores(ln, nega_mask)
    bdiff = scores(jnp.sign(lp), posi_mask) - scores(jnp.sign(ln), nega_mask)
    sp = lambda x: jnp.maximum(-x, 0.0) + jnp.log1p(jnp.exp(-jnp.abs(x)))
    return sp(diff), sp(bdiff), diff, bdiff


if __name__ == "__main__":
    key = jax.random.PRNGKey(0)
    k_pimg, k_nimg, k_bb, k_enc, k_core = jax.random.split(key, 5)

    # Small shapes: 8 items (2 outfits of 4), 4-channel 32x32 images,
    # backbone feat_dim=32, hash/latent dim=16.
    N, C, H, W = 8, 4, 32, 32
    n_groups = 2
    feat_dim, latent_dim = 32, 16

    # Images kept in bf16: the kernel streams them narrow and casts in VMEM.
    posi_imgs = jax.random.normal(k_pimg, (N, C, H, W),
                                  jnp.float32).astype(jnp.bfloat16)
    nega_imgs = jax.random.normal(k_nimg, (N, C, H, W),
                                  jnp.float32).astype(jnp.bfloat16)
    posi_mask = jnp.repeat(jnp.arange(n_groups, dtype=jnp.int32), N // n_groups)
    nega_mask = posi_mask

    # Weight scales keep the latent codes well away from 0 so the binary
    # (sign) branch of the smoke test is numerically stable.
    params = dict(
        w_backbone=2.0 * jax.random.normal(k_bb, (C, feat_dim), jnp.float32),
        b_backbone=jnp.zeros((1, feat_dim), jnp.float32),
        w_enc=8.0 * jax.random.normal(k_enc, (feat_dim, latent_dim), jnp.float32),
        b_enc=jnp.zeros((1, latent_dim), jnp.float32),
        core_w=jax.random.normal(k_core, (latent_dim, 1), jnp.float32),
    )

    # hw_tile=128 forces an 8-tile / 2-split grid at these toy shapes so the
    # streamed accumulate + split-combine path is exercised
    # (production: leave hw_tile=None and let the VMEM-budget sizing pick it).
    loss, accuracy = fashionnet_forward(posi_mask, posi_imgs, nega_mask,
                                        nega_imgs, params, n_groups,
                                        hw_tile=128)
    jax.block_until_ready(loss["rank_loss"])
    jax.block_until_ready(loss["binary_loss"])
    jax.block_until_ready(accuracy["accuracy"])
    jax.block_until_ready(accuracy["binary_accuracy"])

    # Correctness check against the pairwise (triu) reference.
    ref_rank, ref_brank, ref_diff, ref_bdiff = _reference_forward(
        posi_mask, posi_imgs, nega_mask, nega_imgs, params, n_groups)

    np.testing.assert_allclose(np.asarray(loss["rank_loss"]),
                               np.asarray(ref_rank), rtol=5e-3, atol=5e-3)
    np.testing.assert_allclose(np.asarray(loss["binary_loss"]),
                               np.asarray(ref_brank), rtol=5e-3, atol=5e-3)
    ok = np.abs(np.asarray(ref_diff)) > 1e-3
    assert np.array_equal(np.asarray(accuracy["accuracy"])[ok],
                          np.asarray(ref_diff > 0)[ok])
    okb = np.abs(np.asarray(ref_bdiff)) > 1e-3
    assert np.array_equal(np.asarray(accuracy["binary_accuracy"])[okb],
                          np.asarray(ref_bdiff > 0)[okb])

    print("KERNEL_OK")
</pallas_src>

<mosaic_0001>
module attributes {stable_mosaic.version = 11 : i64} {
  func.func @_stream_pool_kernel(%arg0: i32, %arg1: i32, %arg2: memref<32x128xbf16, #tpu.memory_space<vmem>>, %arg3: memref<32x128xbf16, #tpu.memory_space<vmem>>, %arg4: memref<1x32x1xf32, #tpu.memory_space<vmem>>, %arg5: memref<1x32x1xf32, #tpu.memory_space<vmem>>) attributes {dimension_semantics = [#tpu.dimension_semantics<parallel>, #tpu.dimension_semantics<arbitrary>], iteration_bounds = array<i64: 2, 4>, scalar_prefetch = 0 : i64, scratch_operands = 0 : i64, tpu.core_type = #tpu.core_type<tc>, window_params = [{transform_indices = @transform_0, window_bounds = array<i64: 32, 128>}, {transform_indices = @transform_1, window_bounds = array<i64: 32, 128>}, {transform_indices = @transform_2, window_bounds = array<i64: 1, 32, 1>}, {transform_indices = @transform_3, window_bounds = array<i64: 1, 32, 1>}]} {
    %c0_i32 = arith.constant 0 : i32
    %0 = arith.cmpi eq, %arg1, %c0_i32 : i32
    %1 = arith.extui %0 : i1 to i32
    %c0_i32_0 = arith.constant 0 : i32
    %2 = arith.cmpi ne, %1, %c0_i32_0 : i32
    scf.if %2 {
      %cst_17 = arith.constant 0.000000e+00 : f32
      %19 = vector.broadcast %cst_17 : f32 to vector<1x32x1xf32>
      %c0_18 = arith.constant 0 : index
      %c0_19 = arith.constant 0 : index
      %c0_20 = arith.constant 0 : index
      %20 = vector.load %arg4[%c0_18, %c0_19, %c0_20] : memref<1x32x1xf32, #tpu.memory_space<vmem>>, vector<1x32x1xf32>
      tpu.vector_store %arg4[%c0_18, %c0_19, %c0_20], %19 {strides = array<i32>} : memref<1x32x1xf32, #tpu.memory_space<vmem>>, vector<1x32x1xf32>,
      %cst_21 = arith.constant 0.000000e+00 : f32
      %21 = vector.broadcast %cst_21 : f32 to vector<1x32x1xf32>
      %c0_22 = arith.constant 0 : index
      %c0_23 = arith.constant 0 : index
      %c0_24 = arith.constant 0 : index
      %22 = vector.load %arg5[%c0_22, %c0_23, %c0_24] : memref<1x32x1xf32, #tpu.memory_space<vmem>>, vector<1x32x1xf32>
      tpu.vector_store %arg5[%c0_22, %c0_23, %c0_24], %21 {strides = array<i32>} : memref<1x32x1xf32, #tpu.memory_space<vmem>>, vector<1x32x1xf32>,
    } else {
    }
    %c0 = arith.constant 0 : index
    %c0_1 = arith.constant 0 : index
    %c0_2 = arith.constant 0 : index
    %3 = vector.load %arg4[%c0, %c0_1, %c0_2] : memref<1x32x1xf32, #tpu.memory_space<vmem>>, vector<1x32x1xf32>
    %c0_3 = arith.constant 0 : index
    %c0_4 = arith.constant 0 : index
    %4 = vector.load %arg2[%c0_3, %c0_4] : memref<32x128xbf16, #tpu.memory_space<vmem>>, vector<32x128xbf16>
    %5 = arith.extf %4 : vector<32x128xbf16> to vector<32x128xf32>
    %cst = arith.constant dense<0.000000e+00> : vector<32xf32>
    %6 = vector.multi_reduction <add>, %5, %cst [1] : vector<32x128xf32> to vector<32xf32>
    %7 = vector.shape_cast %6 : vector<32xf32> to vector<32x1xf32>
    %8 = vector.shape_cast %7 : vector<32x1xf32> to vector<1x32x1xf32>
    %9 = arith.addf %3, %8 : vector<1x32x1xf32>
    %c0_5 = arith.constant 0 : index
    %c0_6 = arith.constant 0 : index
    %c0_7 = arith.constant 0 : index
    %10 = vector.load %arg4[%c0_5, %c0_6, %c0_7] : memref<1x32x1xf32, #tpu.memory_space<vmem>>, vector<1x32x1xf32>
    tpu.vector_store %arg4[%c0_5, %c0_6, %c0_7], %9 {strides = array<i32>} : memref<1x32x1xf32, #tpu.memory_space<vmem>>, vector<1x32x1xf32>,
    %c0_8 = arith.constant 0 : index
    %c0_9 = arith.constant 0 : index
    %c0_10 = arith.constant 0 : index
    %11 = vector.load %arg5[%c0_8, %c0_9, %c0_10] : memref<1x32x1xf32, #tpu.memory_space<vmem>>, vector<1x32x1xf32>
    %c0_11 = arith.constant 0 : index
    %c0_12 = arith.constant 0 : index
    %12 = vector.load %arg3[%c0_11, %c0_12] : memref<32x128xbf16, #tpu.memory_space<vmem>>, vector<32x128xbf16>
    %13 = arith.extf %12 : vector<32x128xbf16> to vector<32x128xf32>
    %cst_13 = arith.constant dense<0.000000e+00> : vector<32xf32>
    %14 = vector.multi_reduction <add>, %13, %cst_13 [1] : vector<32x128xf32> to vector<32xf32>
    %15 = vector.shape_cast %14 : vector<32xf32> to vector<32x1xf32>
    %16 = vector.shape_cast %15 : vector<32x1xf32> to vector<1x32x1xf32>
    %17 = arith.addf %11, %16 : vector<1x32x1xf32>
    %c0_14 = arith.constant 0 : index
    %c0_15 = arith.constant 0 : index
    %c0_16 = arith.constant 0 : index
    %18 = vector.load %arg5[%c0_14, %c0_15, %c0_16] : memref<1x32x1xf32, #tpu.memory_space<vmem>>, vector<1x32x1xf32>
    tpu.vector_store %arg5[%c0_14, %c0_15, %c0_16], %17 {strides = array<i32>} : memref<1x32x1xf32, #tpu.memory_space<vmem>>, vector<1x32x1xf32>,
    return
  }
  func.func @transform_0(%arg0: i32, %arg1: i32) -> (i32, i32) {
    %c4_i32 = arith.constant 4 : i32
    %0 = arith.muli %arg0, %c4_i32 : i32
    %1 = arith.addi %0, %arg1 : i32
    %c0_i32 = arith.constant 0 : i32
    %c0_i32_0 = arith.constant 0 : i32
    return %c0_i32, %1 : i32, i32
  }
  func.func @transform_1(%arg0: i32, %arg1: i32) -> (i32, i32) {
    %c4_i32 = arith.constant 4 : i32
    %0 = arith.muli %arg0, %c4_i32 : i32
    %1 = arith.addi %0, %arg1 : i32
    %c0_i32 = arith.constant 0 : i32
    %c0_i32_0 = arith.constant 0 : i32
    return %c0_i32, %1 : i32, i32
  }
  func.func @transform_2(%arg0: i32, %arg1: i32) -> (i32, i32, i32) {
    %c0_i32 = arith.constant 0 : i32
    %c0_i32_0 = arith.constant 0 : i32
    %c0_i32_1 = arith.constant 0 : i32
    return %arg0, %c0_i32, %c0_i32_0 : i32, i32, i32
  }
  func.func @transform_3(%arg0: i32, %arg1: i32) -> (i32, i32, i32) {
    %c0_i32 = arith.constant 0 : i32
    %c0_i32_0 = arith.constant 0 : i32
    %c0_i32_1 = arith.constant 0 : i32
    return %arg0, %c0_i32, %c0_i32_0 : i32, i32, i32
  }
}

</mosaic_0001>

<bundles_post_ra>
// kernel: tpu_custom_call.1
= control target key start
LH: loop header
LB: loop body
LE: loop exit
PB: predicated region body
PF: predicated region fallthrough
CT: control target
= control target key end

     0   :  { %s957_s0 = inlined_call_operand.hbm [shape: bf16[32,1024], index: 0, kind: input, shape index: {}]   ;;  %s958_s1 = inlined_call_operand.hbm [shape: bf16[32,1024], index: 1, kind: input, shape index: {}]   ;;  %s959_s2 = inlined_call_operand.vmem [shape: f32[2,32,1], index: 2, kind: output, shape index: {0}]   ;;  %s960_s3 = inlined_call_operand.vmem [shape: f32[2,32,1], index: 3, kind: output, shape index: {1}]  }
   0x1   :  { %963 = sst [smem:[#allocation10_spill]] %s957_s0 }
   0x2   :  { %9 = vsyncpa [#allocation3], 0 }
   0x3   :  { %11 = vsyncpa [#allocation3 + $0x1], 0 }
   0x4   :  { %12 = vsyncpa [#allocation5], 0 }
   0x5   :  { %14 = vsyncpa [#allocation5 + $0x1], 0  ;;  %s756_s12 = smov 0   ;;  %s758_s13 = smov 0  }
   0x6   :  { %s760_s14 = smov 0   ;;  %s762_s15 = smov 0  }
   0x7   :  { %s764_s16 = smov 0   ;;  %s766_s17 = smov 0  }
   0x8   :  { %s768_s18 = smov 0   ;;  %s770_s19 = smov 0  }
   0x9 LB: > { %s478_s20 = sadd.s32 4294967295, %s728_s19   ;;  %s29_s21 = sadd.s32 1, %s720_s17  ;;  %s728_s19 = sphi %s770_s19, %s20_s19   ;;  %s724_s18 = sphi %s768_s18, %s979_s18   ;;  %s720_s17 = sphi %s766_s17, %s978_s17   ;;  %s716_s16 = sphi %s764_s16, %s977_s16   ;;  %s712_s15 = sphi %s762_s15, %s976_s15   ;;  %s708_s14 = sphi %s760_s14, %s975_s14   ;;  %s704_s13 = sphi %s758_s13, %s974_s13   ;;  %s700_s12 = sphi %s756_s12, %s973_s12  }
   0xa   : > { %p30_p0 = scmp.ge.s32.totalorder %s29_s21, 4  ;;  %s32_s22 = sadd.s32 1, %s724_s18 }
   0xb   : > { %s480_s23 = sshll.u32 %s724_s18, 2  ;;  %s43_s24 = sadd.s32 1, %s708_s14 }
   0xc   : > { %s981_s21 = smov (%p30_p0, %s29_s21), 0  ;;  %s983_s22 = smov (!%p30_p0, %s32_s22), %s724_s18 }
   0xd   : > { %964 = sst [smem:[#allocation8_spill]] %s981_s21  ;;  %s803_s25 = sadd.s32 %s720_s17, %s480_s23 }
   0xe   : > { %p50_p1 = scmp.ne.s32.totalorder %s708_s14, %s704_s13  ;;  %p34_p2 = scmp.ge.s32.totalorder %s983_s22, 2 }
   0xf   : > { %p51_p3 = scmp.eq.s32.totalorder %s728_s19, 0  ;;  %p56_p4 = scmp.ne.s32.totalorder %s704_s13, %s700_s12 }
  0x10   : > { %p57_p5 = scmp.eq.s32.totalorder %s478_s20, 0  ;;  %s985_s22 = smov (%p34_p2, %s983_s22), 0 }
  0x11   : > { %965 = sst [smem:[#allocation9_spill]] %s985_s22  ;;  %p811_p6 = por %p51_p3, %p50_p1 }
  0x12   : > { %p815_p7 = por %p57_p5, %p56_p4  ;;  %s481_s28 = sshll.u32 %s985_s22, 2 }
  0x13   : > { %s39_s29 = sadd.s32 %s481_s28, %s981_s21  ;;  %p533_p8 = scmp.lt.s32.totalorder %s728_s19, 8 }
  0x14   : > { %s40_s30 = ssub.s32 %s803_s25, %s39_s29  ;;  %s824_s4 = sand.u32 1, %s708_s14  }
  0x15   : > { %p41_p9 = scmp.eq.s32.totalorder %s40_s30, 0  ;;  %s486_s5 = sshll.u32 %s824_s4, 4 }
  0x16   : > { %s488_s6 = sshll.u32 %s803_s25, 6  ;;  %s968_s0 = sld [smem:[#allocation10_spill]] }
  0x17   : > { %s829_s7 = scalar_select %p41_p9, %s708_s14, %s43_s24  }
  0x18   : > { %s166_s11 = scalar_lea.vmem [#allocation2], %s486_s5  ;;  %p840_p10 = pnand %p533_p8, %p811_p6 }
  0x19   : > { %s174_s12 = sshll.u32 %s166_s11, 4  ;;  %p492_p11 = scmp.ge.s32.totalorder %s728_s19, 1  ;;  %s175_s12 = int_to_ptr.vmem [resolvable:$true] %s174_s12 }
  0x1a   : > { %s163_s23 = scalar_lea.sflag [#allocation3], %s824_s4  ;;  %p604_p12 = pneg %p840_p10 }
  0x1b   : > { %s615_s24 = scalar_lea.vmem %s175_s12, 256  ;;  %s730_s28 = smov [#allocation2]  }
  0x1c   : > { %s173_s10 = scalar_lea.hbm %s968_s0, %s488_s6  ;;  %p616_p13 = scmp.ne.s32.totalorder %s175_s12, %s615_s24 }
  0x1d   : > { %s620_s29 = sshll.u32 %s730_s28, 4  ;;  %s621_s29 = int_to_ptr.vmem [resolvable:$false] %s620_s29 }
  0x1e   : > { %p618_p0 = pnand %p616_p13, %p604_p12  ;;  %s622_s26 = scalar_lea.vmem %s621_s29, 512 }
  0x1f   : > { %p623_p2 = scmp.lt.s32.totalorder %s175_s12, %s621_s29  ;;  %p624_p3 = scmp.lt.s32.totalorder %s622_s26, %s615_s24 }
  0x20   : > { %p619_p1 = pneg %p618_p0 }
  0x21   : > { %p625_p4 = por %p624_p3, %p623_p2 }
  0x23   : > { %p626_p5 = pnand %p625_p4, %p619_p1 }
  0x25   : > { %629 = shalt.err (!%p626_p5)
}
  0x26   : > { %s731_s30 = smov 512   ;;  %s732_s8 = smov 64  }
  0x27   : > { %s733_s9 = smov 4   ;;  %p204_p6 = scmp.lt.s32.totalorder %s728_s19, 9 }
  0x28   : > { %529 = dma.hbm_to_vmem [thread:$0]  (!%p840_p10), %s173_s10, 256, %s175_s12, %s163_s23, %s731_s30, %s732_s8, %s733_s9  }
  0x29   : > { %s195_s24 = scalar_lea.hbm %s958_s1, %s488_s6  ;;  %p861_p8 = pnand %p492_p11, %p204_p6 }
  0x2a   : > { %s188_s26 = scalar_lea.vmem [#allocation4], %s486_s5  ;;  %s185_s22 = scalar_lea.sflag [#allocation5], %s824_s4 }
  0x2b   : > { %s196_s0 = sshll.u32 %s188_s26, 4  ;;  %s734_s25 = smov [#allocation4]   ;;  %s197_s0 = int_to_ptr.vmem [resolvable:$true] %s196_s0 }
  0x2c   : > { %s643_s21 = scalar_lea.vmem %s197_s0, 256  ;;  %s648_s10 = sshll.u32 %s734_s25, 4  ;;  %s649_s10 = int_to_ptr.vmem [resolvable:$false] %s648_s10 }
  0x2d   : > { %p644_p9 = scmp.ne.s32.totalorder %s197_s0, %s643_s21  ;;  %s650_s6 = scalar_lea.vmem %s649_s10, 512 }
  0x2e   : > { %p651_p1 = scmp.lt.s32.totalorder %s197_s0, %s649_s10  ;;  %p652_p11 = scmp.lt.s32.totalorder %s650_s6, %s643_s21 }
  0x2f   : > { %p646_p13 = pnand %p644_p9, %p604_p12 }
  0x30   : > { %p653_p2 = por %p652_p11, %p651_p1 }
  0x31   : > { %p647_p0 = pneg %p646_p13 }
  0x33   : > { %p654_p3 = pnand %p653_p2, %p647_p0 }
  0x35   : > { %657 = shalt.err (!%p654_p3)
}
  0x36   : > { %532 = dma.hbm_to_vmem [thread:$0]  (!%p840_p10), %s195_s24, 256, %s197_s0, %s185_s22, %s731_s30, %s732_s8, %s733_s9  }
  0x37   : > { %208 = sbr.rel (%p861_p8) target bundleno = 231 (0xe7), region = 28  ;;  %s210_s4 = sand.u32 (!%p861_p8), 1, %s704_s13  }
  0x38   : > { %s493_s5 = sshll.u32 (!%p861_p8), %s210_s4, 4  ;;  %s211_s12 = scalar_lea.sflag (!%p861_p8), [#allocation3], %s210_s4 }
  0x39   : > { %s214_s23 = scalar_lea.vmem (!%p861_p8), [#allocation2], %s493_s5 }
  0x3c   : > { %691 = dma.done.wait (%p815_p7), %s211_s12, 256  }
  0x3d   : > { %693 = vsyncadd (%p815_p7), %s211_s12, 4294967040  ;;  %s220_s21 = scalar_lea.sflag [#allocation5], %s210_s4  ;;  %s880_s11 = scalar_lea.vmem [#allocation4], %s493_s5 }
  0x3e   : > { %695 = dma.done.wait (%p815_p7), %s220_s21, 256  }
  0x3f   : > { %697 = vsyncadd (%p815_p7), %s220_s21, 4294967040  ;;  %p260_p10 = scmp.lt.s32.totalorder %s716_s16, 1  ;;  %p499_p12 = scmp.ne.s32.totalorder %s712_s15, 0 }
  0x41   : > { %s987_s16 = smov (!%p260_p10, %s716_s16), 1  ;;  %273 = sbr.rel (%p499_p12) target bundleno = 75 (0x4b), region = 40 }
  0x42   : > { %s502_s0 = sshll.u32 %s987_s16, 5 }
  0x43   : > { %s891_s30 = scalar_lea.vmem %s959_s2, %s502_s0  ;;  %s896_s28 = scalar_lea.vmem %s960_s3, %s502_s0 }
  0x46   : > { %vm274_vm0 = vcmask 7168   ;;  %v735_v0 = vmov 0.0  }
  0x47   : > { %275 = vst.msk [vmem:[%s891_s30] sm:$0xff] %vm274_vm0, %v735_v0  ;;  %276 = vst.msk [vmem:[%s891_s30 + $0x8] sm:$0xff] %vm274_vm0, %v735_v0 }
  0x48   : > { %277 = vst.msk [vmem:[%s891_s30 + $0x10] sm:$0xff] %vm274_vm0, %v735_v0  ;;  %278 = vst.msk [vmem:[%s891_s30 + $0x18] sm:$0xff] %vm274_vm0, %v735_v0 }
  0x49   : > { %279 = vst.msk [vmem:[%s896_s28] sm:$0xff] %vm274_vm0, %v735_v0  ;;  %280 = vst.msk [vmem:[%s896_s28 + $0x8] sm:$0xff] %vm274_vm0, %v735_v0 }
  0x4a   : > { %281 = vst.msk [vmem:[%s896_s28 + $0x10] sm:$0xff] %vm274_vm0, %v735_v0  ;;  %282 = vst.msk [vmem:[%s896_s28 + $0x18] sm:$0xff] %vm274_vm0, %v735_v0 }
  0x4b PF: > { %v520_v1 = vld [vmem:[%s214_s23 + $0x8] sm:$0xff]   ;;  %v505_v2 = vld [vmem:[%s214_s23] sm:$0xff]   ;;  %vm307_vm1 = vcmask 7168  }
  0x4c   : > { %v510_v3 = vunpack.c.l.bf16 %v520_v1  ;;  %v506_v4 = vunpack.c.l.bf16 %v505_v2  ;;  %v511_v5 = vunpack.c.h.bf16 %v520_v1  ;;  %v507_v6 = vunpack.c.h.bf16 %v505_v2  ;;  %v513_v7 = vld [vmem:[%s880_s11] sm:$0xff]   ;;  %v521_v10 = vld [vmem:[%s880_s11 + $0x8] sm:$0xff]  }
  0x4d   : > { %v515_v8 = vunpack.c.h.bf16 %v513_v7  ;;  %v514_v9 = vunpack.c.l.bf16 %v513_v7  ;;  %v519_v11 = vunpack.c.h.bf16 %v521_v10  ;;  %v518_v12 = vunpack.c.l.bf16 %v521_v10 }
  0x4e   : > { %299 = vadd.xlane.f32.xlu1 %v510_v3  ;;  %295 = vadd.xlane.f32.xlu0 %v506_v4  ;;  %v283_v14 = vld [vmem:[%s891_s30] sm:$0xff]  ;;  %v284_v20 = vld [vmem:[%s891_s30 + $0x8] sm:$0xff] }
  0x4f   : > { %v285_v13 = vld [vmem:[%s891_s30 + $0x10] sm:$0xff]  ;;  %v286_v19 = vld [vmem:[%s891_s30 + $0x18] sm:$0xff] }
  0x50   : > { %v313_v25 = vld [vmem:[%s896_s28 + $0x8] sm:$0xff]  ;;  %v312_v26 = vld [vmem:[%s896_s28] sm:$0xff] }
  0x51   : > { %v315_v31 = vld [vmem:[%s896_s28 + $0x18] sm:$0xff]  ;;  %v314_v32 = vld [vmem:[%s896_s28 + $0x10] sm:$0xff] }
  0x52   : > { %301 = vadd.xlane.f32.xlu1 %v511_v5  ;;  %297 = vadd.xlane.f32.xlu0 %v507_v6 }
  0x56   : > { %326 = vadd.xlane.f32.xlu1 %v515_v8  ;;  %324 = vadd.xlane.f32.xlu0 %v514_v9 }
  0x5a   : > { %330 = vadd.xlane.f32.xlu1 %v519_v11  ;;  %328 = vadd.xlane.f32.xlu0 %v518_v12 }
  0xd7   : > { %v300_v15 = vpop.xlane.xlu1 %299  ;;  %v296_v16 = vpop.xlane.xlu0 %295 }
  0xd8   : > { %v305_v17 = vadd.f32 %v300_v15, %v285_v13  ;;  %v303_v18 = vadd.f32 %v296_v16, %v283_v14 }
  0xda   : > { %310 = vst.msk [vmem:[%s891_s30 + $0x10] sm:$0xff] %vm307_vm1, %v305_v17  ;;  %308 = vst.msk [vmem:[%s891_s30] sm:$0xff] %vm307_vm1, %v303_v18 }
  0xdb   : > { %v302_v21 = vpop.xlane.xlu1 %301  ;;  %v298_v22 = vpop.xlane.xlu0 %297 }
  0xdc   : > { %v306_v23 = vadd.f32 %v302_v21, %v286_v19  ;;  %v304_v24 = vadd.f32 %v298_v22, %v284_v20 }
  0xde   : > { %311 = vst.msk [vmem:[%s891_s30 + $0x18] sm:$0xff] %vm307_vm1, %v306_v23  ;;  %309 = vst.msk [vmem:[%s891_s30 + $0x8] sm:$0xff] %vm307_vm1, %v304_v24 }
  0xdf   : > { %v327_v27 = vpop.xlane.xlu1 %326  ;;  %v325_v28 = vpop.xlane.xlu0 %324 }
  0xe0   : > { %v333_v29 = vadd.f32 %v327_v27, %v313_v25  ;;  %v332_v30 = vadd.f32 %v325_v28, %v312_v26 }
  0xe2   : > { %337 = vst.msk [vmem:[%s896_s28 + $0x8] sm:$0xff] %vm307_vm1, %v333_v29  ;;  %336 = vst.msk [vmem:[%s896_s28] sm:$0xff] %vm307_vm1, %v332_v30 }
  0xe3   : > { %v331_v33 = vpop.xlane.xlu1 %330  ;;  %v329_v34 = vpop.xlane.xlu0 %328 }
  0xe4   : > { %v335_v35 = vadd.f32 %v331_v33, %v315_v31  ;;  %v334_v36 = vadd.f32 %v329_v34, %v314_v32 }
  0xe6   : > { %339 = vst.msk [vmem:[%s896_s28 + $0x18] sm:$0xff] %vm307_vm1, %v335_v35  ;;  %338 = vst.msk [vmem:[%s896_s28 + $0x10] sm:$0xff] %vm307_vm1, %v334_v36 }
  0xe7 PF: > { %s20_s19 = sadd.s32 1, %s728_s19   ;;  %s971_s27 = sld [smem:[#allocation8_spill]] }
  0xe8   : > { %p17_p7 = scmp.ge.s32.totalorder %s20_s19, 10   ;;  %s972_s24 = sld [smem:[#allocation9_spill]] }
  0xe9   : > { %s973_s12 = smov %s704_s13  ;;  %s974_s13 = smov %s708_s14 }
  0xea   : > { %s975_s14 = smov %s829_s7  ;;  %s976_s15 = smov %s720_s17 }
  0xeb   : > { %s977_s16 = smov %s724_s18  ;;  %19 = sbr.rel (!%p17_p7) target bundleno = 9 (0x9), region = 97 }
  0xed   : > { %s978_s17 = smov %s971_s27 }
  0xee   : > { %s979_s18 = smov %s972_s24 }
  0xf0   :  { %377 = vsyncpa [#allocation3], 1 }
  0xf1   :  { %379 = vsyncpa [#allocation3 + $0x1], 1 }
  0xf2   :  { %380 = vsyncpa [#allocation5], 1 }
  0xf3   :  { %382 = vsyncpa [#allocation5 + $0x1], 1 }

</bundles_post_ra>
